<compile_context>
chip_gen: v6e
topology: v6e:2x2x1
jax: 0.10.0
libtpu: 0.0.40
codegen_flags: <defaults>
</compile_context>

<pallas_src>
import functools

import jax
import jax.numpy as jnp
from jax.experimental import pallas as pl
from jax.experimental.pallas import tpu as pltpu


def se_kernel(x_ref, w1t_ref, b1_ref, w2t_ref, b2_ref, o_ref, *, hw, use_mxu_fc):
    # x_ref block: (NB, C, HW) -> samples on the leading axis, channels on
    # sublanes, spatial positions on lanes (ragged HW tail masked by Mosaic).

    # ---- Squeeze: per-sample global average pool over the lane axis, in f32.
    pooled = jnp.sum(x_ref[...].astype(jnp.float32), axis=-1) * (1.0 / hw)   # (NB, C)

    w1t = w1t_ref[...].astype(jnp.float32)   # (C, Cr)
    b1 = b1_ref[...].astype(jnp.float32)     # (1, Cr)
    w2t = w2t_ref[...].astype(jnp.float32)   # (Cr, C)
    b2 = b2_ref[...].astype(jnp.float32)     # (1, C)

    # ---- Excite: two tiny fully-connected layers (1x1 convs on pooled input).
    if use_mxu_fc:
        # Large C*Cr: skinny batched matmuls on the MXU, hidden under the DMA.
        h = jnp.dot(pooled, w1t, preferred_element_type=jnp.float32) + b1    # (NB, Cr)
        h = jnp.maximum(h, 0.0)
        s = jnp.dot(h, w2t, preferred_element_type=jnp.float32) + b2         # (NB, C)
    else:
        # Tiny C*Cr (demo): VPU broadcast-multiply + XLU sublane reduce, no MXU.
        h = jnp.sum(pooled[:, :, None] * w1t[None, :, :], axis=1) + b1       # (NB, Cr)
        h = jnp.maximum(h, 0.0)
        s = jnp.sum(h[:, :, None] * w2t[None, :, :], axis=1) + b2            # (NB, C)
    s = jax.nn.sigmoid(s)                                                    # (NB, C)

    # ---- Scale: re-read x from VMEM for the store (do not keep x live across
    # the pool/FC code -> no vreg spills); multiply in the output dtype.
    scale = s.astype(o_ref.dtype)                                            # (NB, C)
    o_ref[...] = x_ref[...] * scale[:, :, None]


def se_forward(x_nchw, w1, b1, w2, b2, *, donate_x=False):
    """x_nchw: (N, C, H, W); w1: (Cr, C); b1: (Cr,); w2: (C, Cr); b2: (C,)."""
    N, C, H, W = x_nchw.shape
    Cr = w1.shape[0]
    HW = H * W
    dsize = jnp.dtype(x_nchw.dtype).itemsize

    # Free reshape, no pad, no post-slice: last block dim equals the full HW
    # extent so the BlockSpec is legal for any HW (masked vst only on the
    # final vreg column).  HBM traffic stays at 1 read + 1 write of x.
    x = x_nchw.reshape(N, C, HW)

    # Tiny parameter re-layouts (negligible, done once).
    w1_t = jnp.transpose(w1)        # (C, Cr)
    b1_r = b1.reshape(1, Cr)        # (1, Cr)
    w2_t = jnp.transpose(w2)        # (Cr, C)
    b2_r = b2.reshape(1, C)         # (1, C)

    # ---- Block sizing (per-generation VMEM budget) -------------------------
    # Double-buffered in + out ~= 4 * NB * C * HW * dsize.  Target ~3 MiB per
    # x block (~12 MiB double-buffered): safe under the 16 MiB v5e scoped
    # default and the 32 MiB v6e/v7x default without touching
    # vmem_limit_bytes.  (v7x physical VMEM is 64 MiB — if you raise the limit
    # for bigger blocks, keep it <= ~48 MiB there.)
    per_sample_bytes = C * HW * dsize
    target_block_bytes = 3 * 1024 * 1024
    nb = max(1, min(N, target_block_bytes // max(per_sample_bytes, 1)))
    # Keep >= 2 grid steps when N allows: feeds both v7x TensorCores and gives
    # the software pipeline something to overlap.
    if N >= 2:
        nb = min(nb, (N + 1) // 2)
    grid_n = pl.cdiv(N, nb)
    # NOTE: if N % nb != 0 the last block's out-of-range rows read unspecified
    # data, but every quantity here is row-confined and the writeback of those
    # rows is masked, so the valid output is unaffected.

    # Tiny excite FCs stay on the VPU/XLU; big production SE blocks use MXU.
    use_mxu_fc = (C * Cr) >= 16384

    kernel = functools.partial(se_kernel, hw=HW, use_mxu_fc=use_mxu_fc)

    out = pl.pallas_call(
        kernel,
        out_shape=jax.ShapeDtypeStruct((N, C, HW), x_nchw.dtype),
        grid=(grid_n,),
        in_specs=[
            pl.BlockSpec((nb, C, HW), lambda n: (n, 0, 0)),
            pl.BlockSpec((C, Cr), lambda n: (0, 0)),
            pl.BlockSpec((1, Cr), lambda n: (0, 0)),
            pl.BlockSpec((Cr, C), lambda n: (0, 0)),
            pl.BlockSpec((1, C), lambda n: (0, 0)),
        ],
        out_specs=pl.BlockSpec((nb, C, HW), lambda n: (n, 0, 0)),
        compiler_params=pltpu.CompilerParams(
            dimension_semantics=("parallel",)),
        # Donating x makes the whole op exactly one read + one in-place write.
        input_output_aliases=({0: 0} if donate_x else {}),
    )(x, w1_t, b1_r, w2_t, b2_r)

    return out.reshape(N, C, H, W)


def se_reference(x_nchw, w1, b1, w2, b2):
    """Pure-JAX reference matching the PyTorch SE forward."""
    pooled = jnp.mean(x_nchw, axis=(2, 3))                     # (N, C)
    h = jnp.maximum(pooled @ w1.T + b1, 0.0)                   # (N, Cr)
    s = jax.nn.sigmoid(h @ w2.T + b2)                          # (N, C)
    return x_nchw * s[:, :, None, None]


if __name__ == "__main__":
    # SE(in_c=16, reduction_ratio=0.25) -> reduced channels = 4
    N, C, H, W = 2, 16, 16, 16
    Cr = int(C * 0.25)

    key = jax.random.PRNGKey(0)
    kx, k1, k2, k3, k4 = jax.random.split(key, 5)

    x = jax.random.normal(kx, (N, C, H, W), dtype=jnp.float32)
    # Conv2d(C, Cr, 1): weight (Cr, C, 1, 1) -> stored as (Cr, C); bias (Cr,)
    w1 = jax.random.normal(k1, (Cr, C), dtype=jnp.float32) * 0.1
    b1 = jax.random.normal(k2, (Cr,), dtype=jnp.float32) * 0.1
    # Conv2d(Cr, C, 1): weight (C, Cr, 1, 1) -> stored as (C, Cr); bias (C,)
    w2 = jax.random.normal(k3, (C, Cr), dtype=jnp.float32) * 0.1
    b2 = jax.random.normal(k4, (C,), dtype=jnp.float32) * 0.1

    ref = se_reference(x, w1, b1, w2, b2)

    out = se_forward(x, w1, b1, w2, b2)
    out = jax.block_until_ready(out)

    assert out.shape == x.shape and out.dtype == x.dtype
    assert jnp.allclose(out, ref, atol=1e-5, rtol=1e-5), "mismatch vs reference"

    print("KERNEL_OK")
</pallas_src>

<mosaic_0001>
module attributes {stable_mosaic.version = 11 : i64} {
  func.func @se_kernel(%arg0: i32, %arg1: memref<1x16x256xf32, #tpu.memory_space<vmem>>, %arg2: memref<16x4xf32, #tpu.memory_space<vmem>>, %arg3: memref<1x4xf32, #tpu.memory_space<vmem>>, %arg4: memref<4x16xf32, #tpu.memory_space<vmem>>, %arg5: memref<1x16xf32, #tpu.memory_space<vmem>>, %arg6: memref<1x16x256xf32, #tpu.memory_space<vmem>>) attributes {dimension_semantics = [#tpu.dimension_semantics<parallel>], iteration_bounds = array<i64: 2>, scalar_prefetch = 0 : i64, scratch_operands = 0 : i64, tpu.core_type = #tpu.core_type<tc>, window_params = [{transform_indices = @transform_0, window_bounds = array<i64: 1, 16, 256>}, {pipeline_mode = #tpu.pipeline_mode<synchronous>, transform_indices = @transform_1, window_bounds = array<i64: 16, 4>}, {pipeline_mode = #tpu.pipeline_mode<synchronous>, transform_indices = @transform_2, window_bounds = array<i64: 1, 4>}, {pipeline_mode = #tpu.pipeline_mode<synchronous>, transform_indices = @transform_3, window_bounds = array<i64: 4, 16>}, {pipeline_mode = #tpu.pipeline_mode<synchronous>, transform_indices = @transform_4, window_bounds = array<i64: 1, 16>}, {transform_indices = @transform_5, window_bounds = array<i64: 1, 16, 256>}]} {
    %c0 = arith.constant 0 : index
    %c0_0 = arith.constant 0 : index
    %c0_1 = arith.constant 0 : index
    %0 = vector.load %arg1[%c0, %c0_0, %c0_1] : memref<1x16x256xf32, #tpu.memory_space<vmem>>, vector<1x16x256xf32>
    %cst = arith.constant dense<0.000000e+00> : vector<1x16xf32>
    %1 = vector.multi_reduction <add>, %0, %cst [2] : vector<1x16x256xf32> to vector<1x16xf32>
    %cst_2 = arith.constant 3.906250e-03 : f32
    %2 = vector.broadcast %cst_2 : f32 to vector<1x16xf32>
    %3 = arith.mulf %1, %2 : vector<1x16xf32>
    %c0_3 = arith.constant 0 : index
    %c0_4 = arith.constant 0 : index
    %4 = vector.load %arg2[%c0_3, %c0_4] : memref<16x4xf32, #tpu.memory_space<vmem>>, vector<16x4xf32>
    %c0_5 = arith.constant 0 : index
    %c0_6 = arith.constant 0 : index
    %5 = vector.load %arg3[%c0_5, %c0_6] : memref<1x4xf32, #tpu.memory_space<vmem>>, vector<1x4xf32>
    %c0_7 = arith.constant 0 : index
    %c0_8 = arith.constant 0 : index
    %6 = vector.load %arg4[%c0_7, %c0_8] : memref<4x16xf32, #tpu.memory_space<vmem>>, vector<4x16xf32>
    %c0_9 = arith.constant 0 : index
    %c0_10 = arith.constant 0 : index
    %7 = vector.load %arg5[%c0_9, %c0_10] : memref<1x16xf32, #tpu.memory_space<vmem>>, vector<1x16xf32>
    %8 = vector.shape_cast %3 : vector<1x16xf32> to vector<1x16x1xf32>
    %9 = vector.shape_cast %4 : vector<16x4xf32> to vector<1x16x4xf32>
    %10 = vector.broadcast %8 : vector<1x16x1xf32> to vector<1x16x4xf32>
    %11 = arith.mulf %10, %9 : vector<1x16x4xf32>
    %cst_11 = arith.constant dense<0.000000e+00> : vector<1x4xf32>
    %12 = vector.multi_reduction <add>, %11, %cst_11 [1] : vector<1x16x4xf32> to vector<1x4xf32>
    %13 = arith.addf %12, %5 : vector<1x4xf32>
    %cst_12 = arith.constant 0.000000e+00 : f32
    %14 = vector.broadcast %cst_12 : f32 to vector<1x4xf32>
    %15 = arith.maximumf %13, %14 : vector<1x4xf32>
    %16 = vector.shape_cast %15 : vector<1x4xf32> to vector<1x4x1xf32>
    %17 = vector.shape_cast %6 : vector<4x16xf32> to vector<1x4x16xf32>
    %18 = vector.broadcast %16 : vector<1x4x1xf32> to vector<1x4x16xf32>
    %19 = arith.mulf %18, %17 : vector<1x4x16xf32>
    %cst_13 = arith.constant dense<0.000000e+00> : vector<1x16xf32>
    %20 = vector.multi_reduction <add>, %19, %cst_13 [1] : vector<1x4x16xf32> to vector<1x16xf32>
    %21 = arith.addf %20, %7 : vector<1x16xf32>
    %22 = arith.negf %21 : vector<1x16xf32>
    %23 = math.exp %22 : vector<1x16xf32>
    %cst_14 = arith.constant 1.000000e+00 : f32
    %24 = vector.broadcast %cst_14 : f32 to vector<1x16xf32>
    %25 = arith.addf %24, %23 : vector<1x16xf32>
    %26 = arith.divf %24, %25 : vector<1x16xf32>
    %c0_15 = arith.constant 0 : index
    %c0_16 = arith.constant 0 : index
    %c0_17 = arith.constant 0 : index
    %27 = vector.load %arg1[%c0_15, %c0_16, %c0_17] : memref<1x16x256xf32, #tpu.memory_space<vmem>>, vector<1x16x256xf32>
    %28 = vector.shape_cast %26 : vector<1x16xf32> to vector<1x16x1xf32>
    %29 = vector.broadcast %28 : vector<1x16x1xf32> to vector<1x16x256xf32>
    %30 = arith.mulf %27, %29 : vector<1x16x256xf32>
    %c0_18 = arith.constant 0 : index
    %c0_19 = arith.constant 0 : index
    %c0_20 = arith.constant 0 : index
    %31 = vector.load %arg6[%c0_18, %c0_19, %c0_20] : memref<1x16x256xf32, #tpu.memory_space<vmem>>, vector<1x16x256xf32>
    tpu.vector_store %arg6[%c0_18, %c0_19, %c0_20], %30 {strides = array<i32>} : memref<1x16x256xf32, #tpu.memory_space<vmem>>, vector<1x16x256xf32>,
    return
  }
  func.func @transform_0(%arg0: i32) -> (i32, i32, i32) {
    %c0_i32 = arith.constant 0 : i32
    %c0_i32_0 = arith.constant 0 : i32
    %c0_i32_1 = arith.constant 0 : i32
    return %arg0, %c0_i32, %c0_i32_0 : i32, i32, i32
  }
  func.func @transform_1(%arg0: i32) -> (i32, i32) {
    %c0_i32 = arith.constant 0 : i32
    %c0_i32_0 = arith.constant 0 : i32
    %c0_i32_1 = arith.constant 0 : i32
    return %c0_i32, %c0_i32_0 : i32, i32
  }
  func.func @transform_2(%arg0: i32) -> (i32, i32) {
    %c0_i32 = arith.constant 0 : i32
    %c0_i32_0 = arith.constant 0 : i32
    %c0_i32_1 = arith.constant 0 : i32
    return %c0_i32, %c0_i32_0 : i32, i32
  }
  func.func @transform_3(%arg0: i32) -> (i32, i32) {
    %c0_i32 = arith.constant 0 : i32
    %c0_i32_0 = arith.constant 0 : i32
    %c0_i32_1 = arith.constant 0 : i32
    return %c0_i32, %c0_i32_0 : i32, i32
  }
  func.func @transform_4(%arg0: i32) -> (i32, i32) {
    %c0_i32 = arith.constant 0 : i32
    %c0_i32_0 = arith.constant 0 : i32
    %c0_i32_1 = arith.constant 0 : i32
    return %c0_i32, %c0_i32_0 : i32, i32
  }
  func.func @transform_5(%arg0: i32) -> (i32, i32, i32) {
    %c0_i32 = arith.constant 0 : i32
    %c0_i32_0 = arith.constant 0 : i32
    %c0_i32_1 = arith.constant 0 : i32
    return %arg0, %c0_i32, %c0_i32_0 : i32, i32, i32
  }
}

</mosaic_0001>

<bundles_post_ra>
// kernel: tpu_custom_call.1
= control target key start
LH: loop header
LB: loop body
LE: loop exit
PB: predicated region body
PF: predicated region fallthrough
CT: control target
= control target key end

     0   :  { %10 = vsyncpa [#allocation3], 0  ;;  %s785_s0 = inlined_call_operand.hbm [shape: f32[2,16,256], index: 0, kind: input, shape index: {}]   ;;  %s786_s1 = inlined_call_operand.vmem [shape: f32[16,4], index: 1, kind: input, shape index: {}]   ;;  %s787_s2 = inlined_call_operand.vmem [shape: f32[1,4], index: 2, kind: input, shape index: {}]   ;;  %s788_s3 = inlined_call_operand.vmem [shape: f32[4,16], index: 3, kind: input, shape index: {}]   ;;  %s789_s4 = inlined_call_operand.vmem [shape: f32[1,16], index: 4, kind: input, shape index: {}]   ;;  %s790_s5 = inlined_call_operand.hbm [shape: f32[2,16,256], index: 5, kind: output, shape index: {}]  }
   0x1   :  { %12 = vsyncpa [#allocation3 + $0x1], 0 }
   0x2   :  { %13 = vsyncpa [#allocation4], 0 }
   0x3   :  { %15 = vsyncpa [#allocation4 + $0x1], 0  ;;  %s604_s18 = smov 0   ;;  %s606_s19 = smov 0  }
   0x4   :  { %s608_s20 = smov 0   ;;  %s610_s21 = smov 0  }
   0x5 LB: > { %s625_s22 = sadd.s32 4294967295, %s566_s21   ;;  %s403_s23 = sadd.s32 4294967294, %s566_s21   ;;  %s566_s21 = sphi %s610_s21, %s805_s21   ;;  %s562_s20 = sphi %s608_s20, %s804_s20   ;;  %s558_s19 = sphi %s606_s19, %s803_s19   ;;  %s554_s18 = sphi %s604_s18, %s802_s18  }
   0x6   : > { %s629_s24 = sadd.s32 1, %s566_s21   ;;  %s28_s25 = sadd.s32 1, %s562_s20 }
   0x7   : > { %s25_s26 = ssub.s32 %s566_s21, %s629_s24  ;;  %p35_p0 = scmp.ne.s32.totalorder %s562_s20, %s558_s19 }
   0x8   : > { %p26_p1 = scmp.eq.s32.totalorder %s25_s26, 0  ;;  %p36_p2 = scmp.eq.s32.totalorder %s566_s21, 0 }
   0x9   : > { %p41_p3 = scmp.ne.s32.totalorder %s558_s19, %s554_s18  ;;  %p42_p4 = scmp.eq.s32.totalorder %s625_s22, 0 }
   0xa   : > { %s641_s27 = scalar_select %p26_p1, %s562_s20, %s28_s25  }
   0xb   : > { %p643_p5 = por %p36_p2, %p35_p0  ;;  %p647_p6 = por %p42_p4, %p41_p3 }
   0xc   : > { %p149_p7 = scmp.eq.s32.totalorder %s625_s22, 1  ;;  %p155_p8 = scmp.eq.s32.totalorder %s403_s23, 1 }
   0xd   : > { %s794_s29 = scalar_select %p647_p6, 1, 0 }
   0xe   : > { %p432_p10 = scmp.lt.s32.totalorder %s566_s21, 2  ;;  %p654_p11 = por %p149_p7, %p35_p0 }
   0xf   : > { %p658_p12 = por %p155_p8, %p41_p3  ;;  %s187_s7 = sand.u32 1, %s562_s20  }
  0x10   : > { %s795_s30 = scalar_select %p654_p11, 1, 0 }
  0x11   : > { %s796_s6 = scalar_select %p658_p12, 1, 0 }
  0x12   : > { %s418_s8 = sshll.u32 %s566_s21, 9  ;;  %s406_s9 = sshll.u32 %s187_s7, 5 }
  0x13   : > { %s667_s12 = scalar_lea.hbm %s785_s0, %s418_s8  ;;  %s191_s13 = scalar_lea.vmem [#allocation2], %s406_s9 }
  0x14   : > { %s198_s14 = sshll.u32 %s191_s13, 4  ;;  %p671_p13 = pnand %p432_p10, %p643_p5  ;;  %s675_s14 = int_to_ptr.vmem [resolvable:$true] %s198_s14 }
  0x15   : > { %s677_s16 = scalar_lea.sflag [#allocation3], %s187_s7  ;;  %s474_s17 = scalar_lea.hbm %s667_s12, 512 }
  0x16   : > { %p475_p0 = scmp.ne.s32.totalorder %s667_s12, %s474_s17  ;;  %p476_p1 = pneg %p671_p13 }
  0x17   : > { %s479_s26 = scalar_lea.hbm %s785_s0, 1024  ;;  %p480_p4 = scmp.lt.s32.totalorder %s667_s12, %s785_s0 }
  0x18   : > { %p477_p2 = pnand %p476_p1, %p475_p0  ;;  %p481_p5 = scmp.lt.s32.totalorder %s479_s26, %s474_s17 }
  0x1a   : > { %p478_p3 = pneg %p477_p2  ;;  %p482_p7 = por %p481_p5, %p480_p4 }
  0x1c   : > { %p483_p8 = pnand %p482_p7, %p478_p3 }
  0x1e   : > { %486 = shalt.err (!%p483_p8)
}
  0x1f   : > { %s487_s7 = scalar_lea.vmem %s675_s14, 512  ;;  %s568_s9 = smov [#allocation2]  }
  0x20   : > { %p488_p10 = scmp.ne.s32.totalorder %s675_s14, %s487_s7  ;;  %s492_s10 = sshll.u32 %s568_s9, 4  ;;  %s493_s10 = int_to_ptr.vmem [resolvable:$false] %s492_s10 }
  0x21   : > { %s494_s11 = scalar_lea.vmem %s493_s10, 1024  ;;  %p495_p2 = scmp.lt.s32.totalorder %s675_s14, %s493_s10 }
  0x22   : > { %p490_p9 = pnand %p488_p10, %p476_p1  ;;  %p496_p12 = scmp.lt.s32.totalorder %s494_s11, %s487_s7 }
  0x24   : > { %p491_p0 = pneg %p490_p9  ;;  %p497_p11 = por %p496_p12, %p495_p2 }
  0x26   : > { %p498_p6 = pnand %p497_p11, %p491_p0 }
  0x28   : > { %501 = shalt.err (!%p498_p6)
}
  0x29   : > { %s569_s13 = smov 256   ;;  %s570_s17 = smov 16  }
  0x2a   : > { %427 = dma.hbm_to_vmem [thread:$0]  (!%p671_p13), %s667_s12, 512, %s675_s14, %s677_s16, %s569_s13, %s569_s13, %s570_s17  }
  0x2b   : > { %p409_p9 = scmp.ge.s32.totalorder %s566_s21, 1  ;;  %p206_p1 = scmp.lt.s32.totalorder %s566_s21, 3 }
  0x2d   : > { %p207_p3 = pnand %p409_p9, %p206_p1 }
  0x2e   : > { %s701_s23 = sand.u32 (!%p207_p3), 1, %s558_s19   ;;  %p798_p6 = scmp.ne.s32.totalorder (!%p207_p3), %s794_s29, 0 }
  0x2f   : > { %210 = sbr.rel (%p207_p3) target bundleno = 521 (0x209), region = 40  ;;  %s410_s25 = sshll.u32 (!%p207_p3), %s701_s23, 5 }
  0x30   : > { %s213_s26 = scalar_lea.sflag (!%p207_p3), [#allocation3], %s701_s23  ;;  %s216_s28 = scalar_lea.vmem (!%p207_p3), [#allocation2], %s410_s25 }
  0x34   : > { %545 = dma.done.wait (%p798_p6), %s213_s26, 512  }
  0x35   : > { %547 = vsyncadd (%p798_p6), %s213_s26, 4294966784  ;;  %v711_v0 = vld [vmem:[%s216_s28] sm:$0xff]  ;;  %v713_v1 = vld [vmem:[%s216_s28 + $0x8] sm:$0xff]  ;;  %vm262_vm0 = vcmask 31744   ;;  %v274_v20 = vlaneseq  ;;  %vm282_vm1 = vcmask 125952   ;;  %s242_s13 = scalar_lea.vmem [#allocation5], %s410_s25 }
  0x36   : > { %v245_v2 = vld [vmem:[%s216_s28 + $0x10] sm:$0xff]  ;;  %v247_v3 = vadd.f32 %v713_v1, %v711_v0  ;;  %v246_v4 = vld [vmem:[%s216_s28 + $0x18] sm:$0xff]  ;;  %v255_v8 = vld [vmem:[%s786_s1] sm:$0xff]  ;;  %s330_s17 = sshll.u32 %s242_s13, 4  ;;  %s419_s26 = sshll.u32 %s625_s22, 9  ;;  %s735_s17 = int_to_ptr.vmem [resolvable:$true] %s330_s17 }
  0x37   : > { %v250_v5 = vadd.f32 %v246_v4, %v245_v2  ;;  %v256_v9 = vld [vmem:[%s786_s1 + $0x8] sm:$0xff]  ;;  %v275_v23 = vshrl.u32 %v274_v20, 7  ;;  %v257_v24 = vld [vmem:[%s787_s2] sm:$0x1]  ;;  %s740_s14 = scalar_lea.hbm %s790_s5, %s419_s26  ;;  %s317_s22 = scalar_lea.sflag [#allocation4], %s701_s23 }
  0x38   : > { %248 = vadd.xlane.f32.xlu0 %v247_v3  ;;  %v258_v30 = vld [vmem:[%s788_s3] sm:$0xf]  ;;  %s502_s25 = scalar_lea.vmem %s735_s17, 512  ;;  %p799_p12 = scmp.ne.s32.totalorder %s795_s30, 0 }
  0x39   : > { %v276_v27 = vsub.s32 0, %v275_v23  ;;  %v259_v39 = vld [vmem:[%s789_s4] sm:$0x1]  ;;  %p503_p11 = scmp.ne.s32.totalorder %s735_s17, %s502_s25  ;;  %s571_s29 = smov [#allocation5]  }
  0x3a   : > { %s506_s15 = sshll.u32 %s571_s29, 4  ;;  %s507_s15 = int_to_ptr.vmem [resolvable:$false] %s506_s15 }
  0x3b   : > { %p504_p13 = pnand %p503_p11, %p799_p12  ;;  %s508_s16 = scalar_lea.vmem %s507_s15, 1024 }
  0x3c   : > { %251 = vadd.xlane.f32.xlu0 %v250_v5  ;;  %p509_p5 = scmp.lt.s32.totalorder %s735_s17, %s507_s15  ;;  %p510_p7 = scmp.lt.s32.totalorder %s508_s16, %s502_s25 }
  0x3d   : > { %p505_p4 = pneg %p504_p13 }
  0x3e   : > { %p511_p8 = por %p510_p7, %p509_p5 }
  0x40   : > { %p512_p10 = pnand %p511_p8, %p505_p4 }
  0xc1   : > { %v249_v6 = vpop.xlane.xlu0 %248 }
  0xc2   : > { %v253_v7 = vmul.f32 0.00390625, %v249_v6 }
  0xc4   : > { %v260_v11 = vmul.f32 %v255_v8, %v253_v7 }
  0xc5   : > { %v252_v10 = vpop.xlane.xlu0 %251 }
  0xc6   : > { %v254_v12 = vmul.f32 0.00390625, %v252_v10  ;;  %v263_v14 = vsel %vm262_vm0, %v260_v11, 0.0 }
  0xc8   : > { %v261_v13 = vmul.f32 %v256_v9, %v254_v12 }
  0xca   : > { %v264_v15 = vsel %vm262_vm0, %v261_v13, 0.0 }
  0xcb   : > { %v265_v16 = vadd.f32 %v264_v15, %v263_v14 }
  0xcd   : > { %v266_v17 = vrot.slane %v265_v16, 4 }
  0xcf   : > { %v267_v18 = vadd.f32 %v266_v17, %v265_v16 }
  0xd1   : > { %v268_v19 = vrot.slane %v267_v18, 2 }
  0xd3   : > { %v269_v21 = vadd.f32 %v268_v19, %v267_v18 }
  0xd5   : > { %v270_v22 = vrot.slane %v269_v21, 1 }
  0xd7   : > { %v271_v25 = vadd.f32 %v270_v22, %v269_v21 }
  0xd9   : > { %v272_v26 = vadd.f32 %v271_v25, %v257_v24 }
  0xdb   : > { %v273_v28 = vmax.f32 %v272_v26, 0.0 }
  0xdd   : > { %v277_v29 = vrot.slane %v273_v28, %v276_v27 }
  0xdf   : > { %279 = vbcast.lane.b32.xlu1 %v277_v29, 256 }
 0x151   : > { %v280_v31 = vpop.permute.xlu1 %279 }
 0x152   : > { %v281_v32 = vmul.f32 %v280_v31, %v258_v30 }
 0x154   : > { %v283_v33 = vsel %vm282_vm1, %v281_v32, 0.0 }
 0x155   : > { %v284_v34 = vrot.slane %v283_v33, 4 }
 0x157   : > { %v285_v35 = vadd.f32 %v284_v34, %v283_v33 }
 0x159   : > { %v286_v36 = vrot.slane %v285_v35, 2 }
 0x15b   : > { %v287_v37 = vadd.f32 %v286_v36, %v285_v35 }
 0x15d   : > { %v288_v38 = vrot.slane %v287_v37, 1 }
 0x15f   : > { %v289_v40 = vadd.f32 %v288_v38, %v287_v37 }
 0x161   : > { %v290_v41 = vadd.f32 %v289_v40, %v259_v39 }
 0x163   : > { %v412_v42 = vmul.f32 -1.442695, %v290_v41 }
 0x165   : > { %470 = vpow2.f32 %v412_v42 }
 0x172   : > { %v471_v43 = vpop.eup %470 }
 0x173   : > { %v294_v44 = vadd.f32 1.0, %v471_v43 }
 0x175   : > { %472 = vrcp.f32 %v294_v44 }
 0x182   : > { %v473_v45 = vpop.eup %472 }
 0x183   : > { %v300_v46 = vrot.slane %v473_v45, %v276_v27 }
 0x185   : > { %306 = vbcast.lane.b32.xlu0 %v300_v46, 264  ;;  %302 = vbcast.lane.b32.xlu1 %v300_v46, 256 }
 0x1f7   : > { %v307_v47 = vpop.permute.xlu0 %306  ;;  %v303_v48 = vpop.permute.xlu1 %302 }
 0x1f8   : > { %v310_v49 = vmul.f32 %v307_v47, %v245_v2  ;;  %v311_v50 = vmul.f32 %v307_v47, %v246_v4  ;;  %v308_v51 = vmul.f32 %v303_v48, %v711_v0  ;;  %v309_v52 = vmul.f32 %v303_v48, %v713_v1 }
 0x1fa   : > { %314 = vst [vmem:[%s242_s13 + $0x10] sm:$0xff] %v310_v49  ;;  %315 = vst [vmem:[%s242_s13 + $0x18] sm:$0xff] %v311_v50 }
 0x1fb   : > { %312 = vst [vmem:[%s242_s13] sm:$0xff] %v308_v51  ;;  %313 = vst [vmem:[%s242_s13 + $0x8] sm:$0xff] %v309_v52 }
 0x1fc   : > { %515 = shalt.err (!%p512_p10)
}
 0x1fd   : > { %s516_s8 = scalar_lea.hbm %s740_s14, 512  ;;  %s520_s10 = scalar_lea.hbm %s790_s5, 1024 }
 0x1fe   : > { %p517_p0 = scmp.ne.s32.totalorder %s740_s14, %s516_s8  ;;  %p521_p1 = scmp.lt.s32.totalorder %s740_s14, %s790_s5 }
 0x1ff   : > { %p522_p3 = scmp.lt.s32.totalorder %s520_s10, %s516_s8 }
 0x200   : > { %p518_p2 = pnand %p517_p0, %p799_p12 }
 0x201   : > { %p523_p6 = por %p522_p3, %p521_p1 }
 0x202   : > { %p519_p9 = pneg %p518_p2 }
 0x204   : > { %p524_p11 = pnand %p523_p6, %p519_p9 }
 0x206   : > { %527 = shalt.err (!%p524_p11)
}
 0x207   : > { %s572_s26 = smov 256   ;;  %s573_s28 = smov 16  }
 0x208   : > { %422 = dma.vmem_to_hbm [thread:$0]  (%p799_p12), %s735_s17, 512, %s740_s14, %s317_s22, %s572_s26, %s572_s26, %s573_s28  }
 0x209 PF: > { %s345_s12 = sand.u32 1, %s554_s18   ;;  %p800_p13 = scmp.ne.s32.totalorder %s796_s6, 0 }
 0x20a   : > { %p801_p4 = scmp.ge.s32.totalorder %s566_s21, 2  ;;  %s346_s25 = scalar_lea.sflag [#allocation4], %s345_s12 }
 0x20c   : > { %p429_p5 = pnand %p801_p4, %p800_p13 }
 0x20e   : > { %p430_p7 = pneg %p429_p5 }
 0x210   : > { %549 = dma.done.wait (%p430_p7), %s346_s25, 512  }
 0x211   : > { %551 = vsyncadd (%p430_p7), %s346_s25, 4294966784  ;;  %p18_p8 = scmp.ge.s32.totalorder %s629_s24, 4   ;;  %s802_s18 = smov %s558_s19 }
 0x212   : > { %s803_s19 = smov %s562_s20  ;;  %s804_s20 = smov %s641_s27 }
 0x213   : > { %s805_s21 = smov %s629_s24  ;;  %20 = sbr.rel (!%p18_p8) target bundleno = 5 (0x5), region = 85 }
 0x218   :  { %351 = vsyncpa [#allocation3], 1 }
 0x219   :  { %353 = vsyncpa [#allocation3 + $0x1], 1 }
 0x21a   :  { %354 = vsyncpa [#allocation4], 1 }
 0x21b   :  { %356 = vsyncpa [#allocation4 + $0x1], 1 }

</bundles_post_ra>
